<compile_context>
chip_gen: v7x
topology: tpu7x:2x2x1
jax: 0.10.0
libtpu: 0.0.40
codegen_flags: <defaults>
</compile_context>

<pallas_src>
import jax
import jax.numpy as jnp
from jax.experimental import pallas as pl
from jax.experimental.pallas import tpu as pltpu

LANES = 128
MAX_ROW_TILE = 2048  # 2048*128*4B = 1 MiB per f32 input block


def _choose_row_tile(rows):
    """Largest multiple of 8 that divides `rows` and is <= MAX_ROW_TILE."""
    best = 8
    t = 8
    limit = min(rows, MAX_ROW_TILE)
    while t <= limit:
        if rows % t == 0:
            best = t
        t += 8
    return best


def _bayesian_loss_partial_kernel(yhat_ref, y_ref, std_ref, out_ref):
    x = yhat_ref[...].astype(jnp.float32)
    y = y_ref[...].astype(jnp.float32) * 0.01  # y / 100
    std = std_ref[...].astype(jnp.float32)

    # Numerically stable BCE-with-logits, elementwise.
    ce = jnp.maximum(x, 0.0) - x * y + jnp.log1p(jnp.exp(-jnp.abs(x)))
    val = jnp.exp(-std) * ce + std

    # Partial-reduce the (ROW_TILE, 128) block into one (8, 128) vreg-shaped
    # tile: regroup whole (8,128) tiles and add them (VPU only, no XLU).
    rows = val.shape[0]
    partial = val.reshape(rows // 8, 8, LANES).sum(axis=0)
    out_ref[...] = partial


def bayesian_loss(yhat, y, std):
    """Pallas TPU implementation of BayesianLoss.forward. Returns a scalar."""
    assert yhat.shape == y.shape == std.shape
    total_elems = yhat.size
    assert total_elems % LANES == 0, "demo assumes size divisible by 128"
    rows = total_elems // LANES
    assert rows % 8 == 0, "demo assumes rows divisible by 8"

    row_tile = _choose_row_tile(rows)
    num_tiles = rows // row_tile

    yhat2 = yhat.reshape(rows, LANES)
    y2 = y.reshape(rows, LANES)
    std2 = std.reshape(rows, LANES)

    in_spec = pl.BlockSpec((row_tile, LANES), lambda i: (i, 0))
    out_spec = pl.BlockSpec((8, LANES), lambda i: (i, 0))

    partials = pl.pallas_call(
        _bayesian_loss_partial_kernel,
        out_shape=jax.ShapeDtypeStruct((num_tiles * 8, LANES), jnp.float32),
        grid=(num_tiles,),
        in_specs=[in_spec, in_spec, in_spec],
        out_specs=out_spec,
        compiler_params=pltpu.CompilerParams(
            dimension_semantics=("parallel",)
        ),
    )(yhat2, y2, std2)

    # Single cross-lane reduce + 0.5 * mean scaling in the wrapper.
    return 0.5 * jnp.sum(partials) / jnp.float32(total_elems)


def bayesian_loss_ref(yhat, y, std):
    y = y / 100.0
    x = yhat
    ce = jnp.maximum(x, 0.0) - x * y + jnp.log1p(jnp.exp(-jnp.abs(x)))
    return 0.5 * jnp.mean(jnp.exp(-std) * ce + std)


if __name__ == "__main__":
    key = jax.random.PRNGKey(0)
    k1, k2, k3 = jax.random.split(key, 3)

    # NCHW inputs, as the PyTorch module would see (logits, targets in [0,100], std).
    shape = (2, 4, 16, 16)
    yhat = jax.random.normal(k1, shape, dtype=jnp.float32)
    y = jax.random.uniform(k2, shape, dtype=jnp.float32, minval=0.0, maxval=100.0)
    std = 0.1 * jax.random.normal(k3, shape, dtype=jnp.float32)

    loss = bayesian_loss(yhat, y, std)
    jax.block_until_ready(loss)

    ref = bayesian_loss_ref(yhat, y, std)
    assert jnp.allclose(loss, ref, rtol=1e-5, atol=1e-6), (loss, ref)

    print("KERNEL_OK")
</pallas_src>

<mosaic_0001>
module attributes {stable_mosaic.version = 11 : i64} {
  func.func @_bayesian_loss_partial_kernel(%arg0: i32, %arg1: memref<16x128xf32, #tpu.memory_space<vmem>>, %arg2: memref<16x128xf32, #tpu.memory_space<vmem>>, %arg3: memref<16x128xf32, #tpu.memory_space<vmem>>, %arg4: memref<8x128xf32, #tpu.memory_space<vmem>>) attributes {dimension_semantics = [#tpu.dimension_semantics<parallel>], iteration_bounds = array<i64: 1>, scalar_prefetch = 0 : i64, scratch_operands = 0 : i64, tpu.core_type = #tpu.core_type<tc>, window_params = [{transform_indices = @transform_0, window_bounds = array<i64: 16, 128>}, {transform_indices = @transform_1, window_bounds = array<i64: 16, 128>}, {transform_indices = @transform_2, window_bounds = array<i64: 16, 128>}, {transform_indices = @transform_3, window_bounds = array<i64: 8, 128>}]} {
    %c0 = arith.constant 0 : index
    %c0_0 = arith.constant 0 : index
    %0 = vector.load %arg1[%c0, %c0_0] : memref<16x128xf32, #tpu.memory_space<vmem>>, vector<16x128xf32>
    %c0_1 = arith.constant 0 : index
    %c0_2 = arith.constant 0 : index
    %1 = vector.load %arg2[%c0_1, %c0_2] : memref<16x128xf32, #tpu.memory_space<vmem>>, vector<16x128xf32>
    %cst = arith.constant 0.00999999977 : f32
    %2 = vector.broadcast %cst : f32 to vector<16x128xf32>
    %3 = arith.mulf %1, %2 : vector<16x128xf32>
    %c0_3 = arith.constant 0 : index
    %c0_4 = arith.constant 0 : index
    %4 = vector.load %arg3[%c0_3, %c0_4] : memref<16x128xf32, #tpu.memory_space<vmem>>, vector<16x128xf32>
    %cst_5 = arith.constant 0.000000e+00 : f32
    %5 = vector.broadcast %cst_5 : f32 to vector<16x128xf32>
    %6 = arith.maximumf %0, %5 : vector<16x128xf32>
    %7 = arith.mulf %0, %3 : vector<16x128xf32>
    %8 = arith.subf %6, %7 : vector<16x128xf32>
    %9 = math.absf %0 : vector<16x128xf32>
    %cst_6 = arith.constant 0.000000e+00 : f32
    %10 = vector.broadcast %cst_6 : f32 to vector<16x128xf32>
    %11 = arith.subf %10, %9 : vector<16x128xf32>
    %12 = math.exp %11 : vector<16x128xf32>
    %13 = math.log1p %12 : vector<16x128xf32>
    %14 = arith.addf %8, %13 : vector<16x128xf32>
    %cst_7 = arith.constant 0.000000e+00 : f32
    %15 = vector.broadcast %cst_7 : f32 to vector<16x128xf32>
    %16 = arith.subf %15, %4 : vector<16x128xf32>
    %17 = math.exp %16 : vector<16x128xf32>
    %18 = arith.mulf %17, %14 : vector<16x128xf32>
    %19 = arith.addf %18, %4 : vector<16x128xf32>
    %20 = vector.shape_cast %19 : vector<16x128xf32> to vector<2x8x128xf32>
    %cst_8 = arith.constant dense<0.000000e+00> : vector<8x128xf32>
    %21 = vector.multi_reduction <add>, %20, %cst_8 [0] : vector<2x8x128xf32> to vector<8x128xf32>
    %c0_9 = arith.constant 0 : index
    %c0_10 = arith.constant 0 : index
    %22 = vector.load %arg4[%c0_9, %c0_10] : memref<8x128xf32, #tpu.memory_space<vmem>>, vector<8x128xf32>
    tpu.vector_store %arg4[%c0_9, %c0_10], %21 {strides = array<i32>} : memref<8x128xf32, #tpu.memory_space<vmem>>, vector<8x128xf32>,
    return
  }
  func.func @transform_0(%arg0: i32) -> (i32, i32) {
    %c0_i32 = arith.constant 0 : i32
    %c0_i32_0 = arith.constant 0 : i32
    return %arg0, %c0_i32 : i32, i32
  }
  func.func @transform_1(%arg0: i32) -> (i32, i32) {
    %c0_i32 = arith.constant 0 : i32
    %c0_i32_0 = arith.constant 0 : i32
    return %arg0, %c0_i32 : i32, i32
  }
  func.func @transform_2(%arg0: i32) -> (i32, i32) {
    %c0_i32 = arith.constant 0 : i32
    %c0_i32_0 = arith.constant 0 : i32
    return %arg0, %c0_i32 : i32, i32
  }
  func.func @transform_3(%arg0: i32) -> (i32, i32) {
    %c0_i32 = arith.constant 0 : i32
    %c0_i32_0 = arith.constant 0 : i32
    return %arg0, %c0_i32 : i32, i32
  }
}

</mosaic_0001>

<bundles_post_ra>
// kernel: tpu_custom_call.1
= control target key start
LH: loop header
LB: loop body
LE: loop exit
PB: predicated region body
PF: predicated region fallthrough
CT: control target
= control target key end

     0   :  { %8 = vsyncpa [#allocation3], 0  ;;  %s328_s0 = inlined_call_operand.hbm [shape: f32[16,128], index: 0, kind: input, shape index: {}]   ;;  %s329_s1 = inlined_call_operand.hbm [shape: f32[16,128], index: 1, kind: input, shape index: {}]   ;;  %s330_s2 = inlined_call_operand.hbm [shape: f32[16,128], index: 2, kind: input, shape index: {}]   ;;  %s331_s3 = inlined_call_operand.hbm [shape: f32[8,128], index: 3, kind: output, shape index: {}]  }
   0x1   :  { %9 = vsyncpa [#allocation6], 0 }
   0x2   :  { %10 = vsyncpa [#allocation4], 0  ;;  %s238_s12 = smov [#allocation5]   ;;  %s239_s14 = smov [#allocation2]  }
   0x3   :  { %s28_s13 = sshll.u32 %s238_s12, 4  ;;  %s16_s15 = sshll.u32 %s239_s14, 4  ;;  %s29_s13 = int_to_ptr.vmem [resolvable:$true] %s28_s13  ;;  %s264_s15 = int_to_ptr.vmem [resolvable:$true] %s16_s15 }
   0x4   :  { %s144_s18 = scalar_lea.hbm %s329_s1, 256 }
   0x5   :  { %p145_p0 = scmp.ne.s32.totalorder %s329_s1, %s144_s18  ;;  %p148_p1 = scmp.lt.u32.totalorder %s144_s18, %s329_s1 }
   0x7   :  { %p150_p2 = pnand %p148_p1, %p145_p0 }
   0x9   :  { %153 = shalt.err (!%p150_p2)
}
   0xa   :  { %s154_s23 = scalar_lea.vmem %s29_s13, 256  ;;  %p159_p4 = scmp.lt.s32.totalorder %s29_s13, %s29_s13 }
   0xb   :  { %p155_p3 = scmp.ne.s32.totalorder %s29_s13, %s154_s23  ;;  %p160_p5 = scmp.lt.s32.totalorder %s154_s23, %s154_s23 }
   0xd   :  { %p161_p6 = por %p160_p5, %p159_p4 }
   0xf   :  { %p162_p7 = pnand %p161_p6, %p155_p3 }
  0x11   :  { %165 = shalt.err (!%p162_p7)
}
  0x12   :  { %s240_s24 = smov 128   ;;  %s241_s25 = smov 8  }
  0x13   :  { %34 = dma.hbm_to_vmem [thread:$0]  %s329_s1, 256, %s29_s13, [#allocation6], %s240_s24, %s240_s24, %s241_s25  }
  0x14   :  { %s166_s30 = scalar_lea.hbm %s328_s0, 256 }
  0x15   :  { %p167_p8 = scmp.ne.s32.totalorder %s328_s0, %s166_s30  ;;  %p170_p9 = scmp.lt.u32.totalorder %s166_s30, %s328_s0 }
  0x17   :  { %p172_p10 = pnand %p170_p9, %p167_p8 }
  0x19   :  { %175 = shalt.err (!%p172_p10)
}
  0x1a   :  { %s176_s8 = scalar_lea.vmem %s264_s15, 256  ;;  %p181_p12 = scmp.lt.s32.totalorder %s264_s15, %s264_s15 }
  0x1b   :  { %p177_p11 = scmp.ne.s32.totalorder %s264_s15, %s176_s8  ;;  %p182_p13 = scmp.lt.s32.totalorder %s176_s8, %s176_s8 }
  0x1d   :  { %p183_p0 = por %p182_p13, %p181_p12 }
  0x1f   :  { %p184_p1 = pnand %p183_p0, %p177_p11 }
  0x21   :  { %187 = shalt.err (!%p184_p1)
}
  0x22   :  { %22 = dma.hbm_to_vmem [thread:$0]  %s328_s0, 256, %s264_s15, [#allocation3], %s240_s24, %s240_s24, %s241_s25  }
  0x23   :  { %s242_s10 = smov [#allocation7]   ;;  %s188_s14 = scalar_lea.hbm %s330_s2, 256 }
  0x24   :  { %s40_s11 = sshll.u32 %s242_s10, 4  ;;  %p189_p2 = scmp.ne.s32.totalorder %s330_s2, %s188_s14  ;;  %s41_s11 = int_to_ptr.vmem [resolvable:$true] %s40_s11 }
  0x25   :  { %p192_p3 = scmp.lt.u32.totalorder %s188_s14, %s330_s2 }
  0x27   :  { %p194_p4 = pnand %p192_p3, %p189_p2 }
  0x29   :  { %197 = shalt.err (!%p194_p4)
}
  0x2a   :  { %s198_s20 = scalar_lea.vmem %s41_s11, 256  ;;  %p203_p6 = scmp.lt.s32.totalorder %s41_s11, %s41_s11 }
  0x2b   :  { %p199_p5 = scmp.ne.s32.totalorder %s41_s11, %s198_s20  ;;  %p204_p7 = scmp.lt.s32.totalorder %s198_s20, %s198_s20 }
  0x2d   :  { %p205_p8 = por %p204_p7, %p203_p6 }
  0x2f   :  { %p206_p9 = pnand %p205_p8, %p199_p5 }
  0x31   :  { %209 = shalt.err (!%p206_p9)
}
  0x32   :  { %46 = dma.hbm_to_vmem [thread:$0]  %s330_s2, 256, %s41_s11, [#allocation6], %s240_s24, %s240_s24, %s241_s25  }
  0x33   :  { %232 = dma.done.wait [#allocation3], 256  }
  0x34   :  { %233 = vsyncadd [#allocation3], 4294967040 }
  0x35   :  { %234 = dma.done.wait [#allocation6], 512  }
  0x36   :  { %235 = vsyncadd [#allocation6], 4294966784  ;;  %v56_v0 = vld [vmem:[#allocation2] sm:$0xff]  ;;  %v57_v1 = vld [vmem:[#allocation2 + $0x8] sm:$0xff]  ;;  %s243_s2 = smov [#allocation8]  }
  0x37   :  { %v70_v2 = vand.u32 2147483647, %v56_v0  ;;  %v71_v3 = vand.u32 2147483647, %v57_v1  ;;  %v62_v8 = vld [vmem:[#allocation7] sm:$0xff]  ;;  %v63_v9 = vld [vmem:[#allocation7 + $0x8] sm:$0xff] }
  0x38   :  { %v98_v10 = vsub.f32 0.0, %v62_v8  ;;  %v99_v11 = vsub.f32 0.0, %v63_v9  ;;  %v58_v15 = vld [vmem:[#allocation5] sm:$0xff]  ;;  %v59_v18 = vld [vmem:[#allocation5 + $0x8] sm:$0xff]  ;;  %v64_v25 = vmax.f32 %v56_v0, 0.0  ;;  %v65_v29 = vmax.f32 %v57_v1, 0.0 }
  0x39   :  { %v72_v4 = vsub.f32 0.0, %v70_v2  ;;  %v73_v5 = vsub.f32 0.0, %v71_v3  ;;  %v60_v21 = vmul.f32 0.01, %v58_v15  ;;  %v61_v23 = vmul.f32 0.01, %v59_v18 }
  0x3a   :  { %v100_v17 = vmul.f32 1.442695, %v98_v10  ;;  %v102_v19 = vmul.f32 1.442695, %v99_v11  ;;  %s116_s21 = sshll.u32 %s243_s2, 4  ;;  %s117_s21 = int_to_ptr.vmem [resolvable:$true] %s116_s21 }
  0x3b   :  { %v74_v6 = vmul.f32 1.442695, %v72_v4  ;;  %v76_v7 = vmul.f32 1.442695, %v73_v5  ;;  %v66_v26 = vmul.f32 %v60_v21, %v56_v0  ;;  %v67_v30 = vmul.f32 %v61_v23, %v57_v1  ;;  %s210_s22 = scalar_lea.vmem %s117_s21, 128  ;;  %p215_p11 = scmp.lt.s32.totalorder %s117_s21, %s117_s21 }
  0x3c   :  { %p211_p10 = scmp.ne.s32.totalorder %s117_s21, %s210_s22  ;;  %p216_p12 = scmp.lt.s32.totalorder %s210_s22, %s210_s22 }
  0x3d   :  { %132 = vpow2.f32 %v74_v6  ;;  %v68_v34 = vsub.f32 %v64_v25, %v66_v26  ;;  %v69_v37 = vsub.f32 %v65_v29, %v67_v30 }
  0x3e   :  { %134 = vpow2.f32 %v76_v7  ;;  %p217_p13 = por %p216_p12, %p215_p11 }
  0x40   :  { %p218_p0 = pnand %p217_p13, %p211_p10 }
  0x47   :  { %v133_v12 = vpop.eup %132 }
  0x48   :  { %v135_v13 = vpop.eup %134  ;;  %v78_v14 = vadd.f32 1.0, %v133_v12  ;;  %v81_v20 = vmul.f32 -0.5, %v133_v12  ;;  %v84_v27 = vand.u32 2147483647, %v133_v12 }
  0x49   :  { %v87_v16 = vadd.f32 1.0, %v135_v13  ;;  %v90_v22 = vmul.f32 -0.5, %v135_v13  ;;  %v93_v31 = vand.u32 2147483647, %v135_v13 }
  0x4a   :  { %136 = vlog2.f32 %v78_v14  ;;  %v82_v24 = vadd.f32 1.0, %v81_v20  ;;  %vm85_vm0 = vcmp.lt.f32.partialorder %v84_v27, 0.0004427343 }
  0x4b   :  { %138 = vlog2.f32 %v87_v16  ;;  %v91_v28 = vadd.f32 1.0, %v90_v22  ;;  %vm94_vm1 = vcmp.lt.f32.partialorder %v93_v31, 0.0004427343 }
  0x4c   :  { %140 = vpow2.f32 %v100_v17  ;;  %v83_v32 = vmul.f32 %v133_v12, %v82_v24 }
  0x4d   :  { %142 = vpow2.f32 %v102_v19  ;;  %v92_v35 = vmul.f32 %v135_v13, %v91_v28 }
  0x54   :  { %v137_v33 = vpop.eup %136 }
  0x55   :  { %v139_v36 = vpop.eup %138  ;;  %v80_v38 = vmul.f32 0.6931472, %v137_v33 }
  0x56   :  { %v89_v39 = vmul.f32 0.6931472, %v139_v36  ;;  %v141_v40 = vpop.eup %140 }
  0x57   :  { %v86_v41 = vsel %vm85_vm0, %v83_v32, %v80_v38  ;;  %v143_v42 = vpop.eup %142 }
  0x58   :  { %v95_v43 = vsel %vm94_vm1, %v92_v35, %v89_v39  ;;  %v96_v44 = vadd.f32 %v86_v41, %v68_v34 }
  0x59   :  { %v97_v45 = vadd.f32 %v95_v43, %v69_v37 }
  0x5a   :  { %v104_v46 = vmul.f32 %v141_v40, %v96_v44 }
  0x5b   :  { %v105_v47 = vmul.f32 %v143_v42, %v97_v45 }
  0x5c   :  { %v106_v48 = vadd.f32 %v104_v46, %v62_v8 }
  0x5d   :  { %v107_v49 = vadd.f32 %v105_v47, %v63_v9 }
  0x5f   :  { %v108_v50 = vadd.f32 %v107_v49, %v106_v48 }
  0x61   :  { %109 = vst [vmem:[#allocation8] sm:$0xff] %v108_v50 }
  0x62   :  { %221 = shalt.err (!%p218_p0)
}
  0x63   :  { %s222_s25 = scalar_lea.hbm %s331_s3, 128 }
  0x64   :  { %p223_p1 = scmp.ne.s32.totalorder %s331_s3, %s222_s25  ;;  %p226_p2 = scmp.lt.u32.totalorder %s222_s25, %s331_s3 }
  0x66   :  { %p228_p3 = pnand %p226_p2, %p223_p1 }
  0x68   :  { %231 = shalt.err (!%p228_p3)
}
  0x69   :  { %119 = dma.vmem_to_hbm [thread:$0]  %s117_s21, 128, %s331_s3, [#allocation4]  }
  0x6a   :  { %236 = dma.done.wait [#allocation4], 128  }
  0x6b   :  { %237 = vsyncadd [#allocation4], 4294967168 }
  0x6c   :  { %123 = vsyncpa [#allocation3], 1 }
  0x6d   :  { %124 = vsyncpa [#allocation6], 1 }
  0x6e   :  { %125 = vsyncpa [#allocation4], 1 }

</bundles_post_ra>
